<compile_context>
chip_gen: v6e
topology: v6e:2x2x1
jax: 0.10.0
libtpu: 0.0.40
codegen_flags: <defaults>
</compile_context>

<pallas_src>
import functools
import math

import jax
import jax.numpy as jnp
from jax.experimental import pallas as pl
from jax.experimental.pallas import tpu as pltpu


def _mhsa_kernel(xq_ref, xk_ref, xv_ref,
                 wq_ref, wk_ref, wv_ref, wo_ref,
                 bq_ref, bk_ref, bv_ref, bo_ref,
                 out_ref,
                 *, num_heads, head_dim, seq_len, block_batch, matmul_dtype):
    H, hd, T, Bt = num_heads, head_dim, seq_len, block_batch

    def project(x_ref, w_ref, b_ref):
        # bf16 operands on the MXU, f32 accumulation; bias add in f32 on the VPU.
        # (q-scaling is already folded into wq/bq in the wrapper.)
        return jnp.dot(x_ref[...].astype(matmul_dtype), w_ref[...],
                       preferred_element_type=jnp.float32) + b_ref[0]

    # (Bt*T, E) slabs -> single big projection matmuls (M = Bt*T, N = K = E).
    q = project(xq_ref, wq_ref, bq_ref)
    k = project(xk_ref, wk_ref, bk_ref)
    v = project(xv_ref, wv_ref, bv_ref)

    def split_heads(x):
        # (Bt*T, E) -> (Bt*H, T, hd); batch index = b*H + h.  Static sub-tile views
        # gathered with one stack; all downstream matmuls are batched over Bt*H.
        heads = [x[b * T:(b + 1) * T, h * hd:(h + 1) * hd]
                 for b in range(Bt) for h in range(H)]
        return jnp.stack(heads, axis=0)

    qh = split_heads(q).astype(matmul_dtype)
    kh = split_heads(k).astype(matmul_dtype)
    vh = split_heads(v).astype(matmul_dtype)

    # Batched NT matmul over all (batch, head) pairs — no `.T`, no per-head dot loop.
    scores = jnp.einsum('bqd,bkd->bqk', qh, kh,
                        preferred_element_type=jnp.float32)        # (Bt*H, T, T) f32

    # Softmax in f32 (matches F.softmax(..., dtype=torch.float32)).
    m = jnp.max(scores, axis=-1, keepdims=True)
    e = jnp.exp(scores - m)
    denom = jnp.sum(e, axis=-1, keepdims=True)
    p = e * pl.reciprocal(denom, approx=True)                      # EUP reciprocal
    # dropout p = 0.0 -> identity.
    # TODO(synk): PRNG-masked dropout (pltpu.prng_seed / stateful_bernoulli) if p > 0.

    attn = jnp.einsum('bqk,bkd->bqd', p.astype(matmul_dtype), vh,
                      preferred_element_type=jnp.float32)          # (Bt*H, T, hd) f32

    # Merge heads back to the concatenated (Bt*T, E) layout, then one 2-D out-proj.
    attn2d = jnp.concatenate(
        [jnp.concatenate([attn[b * H + h] for h in range(H)], axis=-1)  # (T, E)
         for b in range(Bt)],
        axis=0)                                                         # (Bt*T, E)

    out = jnp.dot(attn2d.astype(matmul_dtype), wo_ref[...],
                  preferred_element_type=jnp.float32) + bo_ref[0]
    out_ref[...] = out.astype(out_ref.dtype)


def prepare_params(params, *, num_heads, matmul_dtype=jnp.bfloat16):
    """One-time parameter prep (do NOT redo per call):
       transpose Linear weights to (in, out), fold the 1/sqrt(head_dim) scaling into
       Wq/bq, and pre-cast weights to bf16 for the MXU."""
    E = params["wq"].shape[0]
    hd = E // num_heads
    scaling = hd ** (-0.5)
    f32 = jnp.float32
    return {
        "wq": (params["wq"].T * scaling).astype(matmul_dtype),
        "wk": params["wk"].T.astype(matmul_dtype),
        "wv": params["wv"].T.astype(matmul_dtype),
        "wo": params["wo"].T.astype(matmul_dtype),
        "bq": (params["bq"] * scaling).reshape(1, E).astype(f32),
        "bk": params["bk"].reshape(1, E).astype(f32),
        "bv": params["bv"].reshape(1, E).astype(f32),
        "bo": params["bo"].reshape(1, E).astype(f32),
    }


def _vmem_limit_bytes(rows, E, H, T, Bt):
    weights = 4 * E * E * 2 * 2                       # 4 bf16 weights, double-buffered
    biases = 4 * E * 4 * 2
    acts = 4 * rows * E * 4 * 2                       # 3 inputs + 1 output, 2 buffers
    inter = 10 * rows * E * 4 + 3 * Bt * H * T * T * 4  # q/k/v/attn (+bf16 copies), scores
    est = weights + biases + acts + inter
    # Generous 2x headroom; keep >= the default scoped limit and <= physical VMEM.
    return int(min(128 * 1024 * 1024, max(32 * 1024 * 1024, 2 * est)))


def multihead_self_attention(query, key, value, prepared, *, num_heads,
                             block_batch=None, matmul_dtype=jnp.bfloat16):
    """query/key/value: (B, T, E) float32. prepared: dict from prepare_params."""
    B, T, E = query.shape
    assert E % num_heads == 0, "embed_dim must be divisible by num_heads"
    head_dim = E // num_heads

    # Pick Bt (batch rows per grid step) so Bt*T >= 256 when possible (MXU-native M),
    # while keeping Bt a divisor of B and the row block sublane-aligned.
    if block_batch is None:
        want = max(1, -(-256 // T))                      # ceil(256 / T)
        divisors = [d for d in range(1, B + 1) if B % d == 0]
        block_batch = next((d for d in divisors if d >= want), B)
    Bt = block_batch
    assert B % Bt == 0
    if (Bt * T) % 8 != 0:
        Bt = B                                           # full-extent block is always legal
    rows = Bt * T

    # Present activations / output as 2-D (B*T, E) slabs: big-M projections and a
    # dense 2-D output store; the outer reshapes are free metadata ops.
    q2 = query.reshape(B * T, E)
    k2 = key.reshape(B * T, E)
    v2 = value.reshape(B * T, E)

    act_spec = pl.BlockSpec((rows, E), lambda g: (g, 0))
    w_spec = pl.BlockSpec((E, E), lambda g: (0, 0))      # grid-invariant: fetched once
    b_spec = pl.BlockSpec((1, E), lambda g: (0, 0))

    kernel = functools.partial(
        _mhsa_kernel, num_heads=num_heads, head_dim=head_dim, seq_len=T,
        block_batch=Bt, matmul_dtype=matmul_dtype)

    out2 = pl.pallas_call(
        kernel,
        out_shape=jax.ShapeDtypeStruct((B * T, E), query.dtype),
        grid_spec=pltpu.PrefetchScalarGridSpec(
            num_scalar_prefetch=0,
            grid=(B // Bt,),
            in_specs=[act_spec, act_spec, act_spec,
                      w_spec, w_spec, w_spec, w_spec,
                      b_spec, b_spec, b_spec, b_spec],
            out_specs=act_spec,
        ),
        compiler_params=pltpu.CompilerParams(
            dimension_semantics=("parallel",),           # megacore-shardable batch axis
            vmem_limit_bytes=_vmem_limit_bytes(rows, E, num_heads, T, Bt)),
    )(q2, k2, v2,
      prepared["wq"], prepared["wk"], prepared["wv"], prepared["wo"],
      prepared["bq"], prepared["bk"], prepared["bv"], prepared["bo"])

    return out2.reshape(B, T, E)


def _reference(query, key, value, params, *, num_heads):
    """Pure-JAX f32 reference mirroring the PyTorch forward exactly."""
    B, T, E = query.shape
    hd = E // num_heads
    scaling = hd ** (-0.5)

    def lin(x, w, b):
        return x @ w.T + b

    q = lin(query, params["wq"], params["bq"]) * scaling
    k = lin(key, params["wk"], params["bk"])
    v = lin(value, params["wv"], params["bv"])

    def to_heads(x):
        return x.reshape(B, T, num_heads, hd).transpose(0, 2, 1, 3).reshape(B * num_heads, T, hd)

    q, k, v = to_heads(q), to_heads(k), to_heads(v)
    aw = jnp.einsum("bqd,bkd->bqk", q, k)
    aw = jax.nn.softmax(aw.astype(jnp.float32), axis=-1).astype(aw.dtype)
    attn = jnp.einsum("bqk,bkd->bqd", aw, v)
    attn = attn.transpose(1, 0, 2).reshape(T, B, E).transpose(1, 0, 2)
    return lin(attn, params["wo"], params["bo"])


def _xavier_uniform(key, shape, gain=1.0):
    fan_out, fan_in = shape
    a = gain * math.sqrt(6.0 / (fan_in + fan_out))
    return jax.random.uniform(key, shape, jnp.float32, minval=-a, maxval=a)


if __name__ == "__main__":
    B, T, E, H = 2, 8, 32, 4

    root = jax.random.PRNGKey(0)
    keys = jax.random.split(root, 8)

    params = {
        "wk": _xavier_uniform(keys[0], (E, E), gain=1 / math.sqrt(2)),
        "wv": _xavier_uniform(keys[1], (E, E), gain=1 / math.sqrt(2)),
        "wq": _xavier_uniform(keys[2], (E, E), gain=1 / math.sqrt(2)),
        "wo": _xavier_uniform(keys[3], (E, E), gain=1.0),
        "bk": jax.random.normal(keys[4], (E,), jnp.float32) * 0.02,
        "bv": jax.random.normal(keys[5], (E,), jnp.float32) * 0.02,
        "bq": jax.random.normal(keys[6], (E,), jnp.float32) * 0.02,
        "bo": jnp.zeros((E,), jnp.float32),
    }

    kq, kk, kv = jax.random.split(keys[7], 3)
    query = jax.random.normal(kq, (B, T, E), jnp.float32)
    key_in = jax.random.normal(kk, (B, T, E), jnp.float32)
    value = jax.random.normal(kv, (B, T, E), jnp.float32)

    # One-time parameter preparation (transpose, fold scaling, bf16 cast).
    prepared = prepare_params(params, num_heads=H)

    mhsa = jax.jit(functools.partial(multihead_self_attention, num_heads=H))
    out = mhsa(query, key_in, value, prepared)
    out = jax.block_until_ready(out)

    ref = _reference(query, key_in, value, params, num_heads=H)
    assert out.shape == (B, T, E)
    # Tolerance accounts for bf16 MXU matmuls (f32 accumulation) and the EUP
    # approximate reciprocal; softmax itself is computed in f32.
    max_err = jnp.max(jnp.abs(out - ref))
    assert jnp.allclose(out, ref, atol=2e-2, rtol=2e-2), f"max abs err {max_err}"

    print("KERNEL_OK")
</pallas_src>

<mosaic_0001>
module attributes {stable_mosaic.version = 11 : i64} {
  func.func @_mhsa_kernel(%arg0: i32, %arg1: memref<16x32xf32, #tpu.memory_space<vmem>>, %arg2: memref<16x32xf32, #tpu.memory_space<vmem>>, %arg3: memref<16x32xf32, #tpu.memory_space<vmem>>, %arg4: memref<32x32xbf16, #tpu.memory_space<vmem>>, %arg5: memref<32x32xbf16, #tpu.memory_space<vmem>>, %arg6: memref<32x32xbf16, #tpu.memory_space<vmem>>, %arg7: memref<32x32xbf16, #tpu.memory_space<vmem>>, %arg8: memref<1x32xf32, #tpu.memory_space<vmem>>, %arg9: memref<1x32xf32, #tpu.memory_space<vmem>>, %arg10: memref<1x32xf32, #tpu.memory_space<vmem>>, %arg11: memref<1x32xf32, #tpu.memory_space<vmem>>, %arg12: memref<16x32xf32, #tpu.memory_space<vmem>>) attributes {dimension_semantics = [#tpu.dimension_semantics<parallel>], iteration_bounds = array<i64: 1>, scalar_prefetch = 0 : i64, scratch_operands = 0 : i64, tpu.core_type = #tpu.core_type<tc>, window_params = [{transform_indices = @transform_0, window_bounds = array<i64: 16, 32>}, {transform_indices = @transform_1, window_bounds = array<i64: 16, 32>}, {transform_indices = @transform_2, window_bounds = array<i64: 16, 32>}, {pipeline_mode = #tpu.pipeline_mode<synchronous>, transform_indices = @transform_3, window_bounds = array<i64: 32, 32>}, {pipeline_mode = #tpu.pipeline_mode<synchronous>, transform_indices = @transform_4, window_bounds = array<i64: 32, 32>}, {pipeline_mode = #tpu.pipeline_mode<synchronous>, transform_indices = @transform_5, window_bounds = array<i64: 32, 32>}, {pipeline_mode = #tpu.pipeline_mode<synchronous>, transform_indices = @transform_6, window_bounds = array<i64: 32, 32>}, {pipeline_mode = #tpu.pipeline_mode<synchronous>, transform_indices = @transform_7, window_bounds = array<i64: 1, 32>}, {pipeline_mode = #tpu.pipeline_mode<synchronous>, transform_indices = @transform_8, window_bounds = array<i64: 1, 32>}, {pipeline_mode = #tpu.pipeline_mode<synchronous>, transform_indices = @transform_9, window_bounds = array<i64: 1, 32>}, {pipeline_mode = #tpu.pipeline_mode<synchronous>, transform_indices = @transform_10, window_bounds = array<i64: 1, 32>}, {transform_indices = @transform_11, window_bounds = array<i64: 16, 32>}]} {
    %c0 = arith.constant 0 : index
    %c0_0 = arith.constant 0 : index
    %0 = vector.load %arg1[%c0, %c0_0] : memref<16x32xf32, #tpu.memory_space<vmem>>, vector<16x32xf32>
    %1 = arith.truncf %0 : vector<16x32xf32> to vector<16x32xbf16>
    %c0_1 = arith.constant 0 : index
    %c0_2 = arith.constant 0 : index
    %2 = vector.load %arg4[%c0_1, %c0_2] : memref<32x32xbf16, #tpu.memory_space<vmem>>, vector<32x32xbf16>
    %cst = arith.constant dense<0.000000e+00> : vector<16x32xf32>
    %3 = tpu.matmul %1, %2, %cst {dimension_numbers = #tpu.dot_dimension_numbers<[1], [0], [0], [1], [0, 0, 1, 1], [], []>} : vector<16x32xbf16>, vector<32x32xbf16>, vector<16x32xf32> -> vector<16x32xf32>
    %c0_3 = arith.constant 0 : index
    %c0_4 = arith.constant 0 : index
    %4 = vector.load %arg8[%c0_3, %c0_4] : memref<1x32xf32, #tpu.memory_space<vmem>>, vector<1x32xf32>
    %5 = vector.shape_cast %4 : vector<1x32xf32> to vector<32xf32>
    %6 = vector.shape_cast %5 : vector<32xf32> to vector<1x32xf32>
    %7 = vector.broadcast %6 : vector<1x32xf32> to vector<16x32xf32>
    %8 = arith.addf %3, %7 : vector<16x32xf32>
    %c0_5 = arith.constant 0 : index
    %c0_6 = arith.constant 0 : index
    %9 = vector.load %arg2[%c0_5, %c0_6] : memref<16x32xf32, #tpu.memory_space<vmem>>, vector<16x32xf32>
    %10 = arith.truncf %9 : vector<16x32xf32> to vector<16x32xbf16>
    %c0_7 = arith.constant 0 : index
    %c0_8 = arith.constant 0 : index
    %11 = vector.load %arg5[%c0_7, %c0_8] : memref<32x32xbf16, #tpu.memory_space<vmem>>, vector<32x32xbf16>
    %cst_9 = arith.constant dense<0.000000e+00> : vector<16x32xf32>
    %12 = tpu.matmul %10, %11, %cst_9 {dimension_numbers = #tpu.dot_dimension_numbers<[1], [0], [0], [1], [0, 0, 1, 1], [], []>} : vector<16x32xbf16>, vector<32x32xbf16>, vector<16x32xf32> -> vector<16x32xf32>
    %c0_10 = arith.constant 0 : index
    %c0_11 = arith.constant 0 : index
    %13 = vector.load %arg9[%c0_10, %c0_11] : memref<1x32xf32, #tpu.memory_space<vmem>>, vector<1x32xf32>
    %14 = vector.shape_cast %13 : vector<1x32xf32> to vector<32xf32>
    %15 = vector.shape_cast %14 : vector<32xf32> to vector<1x32xf32>
    %16 = vector.broadcast %15 : vector<1x32xf32> to vector<16x32xf32>
    %17 = arith.addf %12, %16 : vector<16x32xf32>
    %c0_12 = arith.constant 0 : index
    %c0_13 = arith.constant 0 : index
    %18 = vector.load %arg3[%c0_12, %c0_13] : memref<16x32xf32, #tpu.memory_space<vmem>>, vector<16x32xf32>
    %19 = arith.truncf %18 : vector<16x32xf32> to vector<16x32xbf16>
    %c0_14 = arith.constant 0 : index
    %c0_15 = arith.constant 0 : index
    %20 = vector.load %arg6[%c0_14, %c0_15] : memref<32x32xbf16, #tpu.memory_space<vmem>>, vector<32x32xbf16>
    %cst_16 = arith.constant dense<0.000000e+00> : vector<16x32xf32>
    %21 = tpu.matmul %19, %20, %cst_16 {dimension_numbers = #tpu.dot_dimension_numbers<[1], [0], [0], [1], [0, 0, 1, 1], [], []>} : vector<16x32xbf16>, vector<32x32xbf16>, vector<16x32xf32> -> vector<16x32xf32>
    %c0_17 = arith.constant 0 : index
    %c0_18 = arith.constant 0 : index
    %22 = vector.load %arg10[%c0_17, %c0_18] : memref<1x32xf32, #tpu.memory_space<vmem>>, vector<1x32xf32>
    %23 = vector.shape_cast %22 : vector<1x32xf32> to vector<32xf32>
    %24 = vector.shape_cast %23 : vector<32xf32> to vector<1x32xf32>
    %25 = vector.broadcast %24 : vector<1x32xf32> to vector<16x32xf32>
    %26 = arith.addf %21, %25 : vector<16x32xf32>
    %27 = vector.extract_strided_slice %8 {offsets = [0, 0], sizes = [8, 8], strides = [1, 1]} : vector<16x32xf32> to vector<8x8xf32>
    %28 = vector.extract_strided_slice %8 {offsets = [0, 8], sizes = [8, 8], strides = [1, 1]} : vector<16x32xf32> to vector<8x8xf32>
    %29 = vector.extract_strided_slice %8 {offsets = [0, 16], sizes = [8, 8], strides = [1, 1]} : vector<16x32xf32> to vector<8x8xf32>
    %30 = vector.extract_strided_slice %8 {offsets = [0, 24], sizes = [8, 8], strides = [1, 1]} : vector<16x32xf32> to vector<8x8xf32>
    %31 = vector.extract_strided_slice %8 {offsets = [8, 0], sizes = [8, 8], strides = [1, 1]} : vector<16x32xf32> to vector<8x8xf32>
    %32 = vector.extract_strided_slice %8 {offsets = [8, 8], sizes = [8, 8], strides = [1, 1]} : vector<16x32xf32> to vector<8x8xf32>
    %33 = vector.extract_strided_slice %8 {offsets = [8, 16], sizes = [8, 8], strides = [1, 1]} : vector<16x32xf32> to vector<8x8xf32>
    %34 = vector.extract_strided_slice %8 {offsets = [8, 24], sizes = [8, 8], strides = [1, 1]} : vector<16x32xf32> to vector<8x8xf32>
    %35 = vector.shape_cast %27 : vector<8x8xf32> to vector<1x8x8xf32>
    %36 = vector.shape_cast %28 : vector<8x8xf32> to vector<1x8x8xf32>
    %37 = vector.shape_cast %29 : vector<8x8xf32> to vector<1x8x8xf32>
    %38 = vector.shape_cast %30 : vector<8x8xf32> to vector<1x8x8xf32>
    %39 = vector.shape_cast %31 : vector<8x8xf32> to vector<1x8x8xf32>
    %40 = vector.shape_cast %32 : vector<8x8xf32> to vector<1x8x8xf32>
    %41 = vector.shape_cast %33 : vector<8x8xf32> to vector<1x8x8xf32>
    %42 = vector.shape_cast %34 : vector<8x8xf32> to vector<1x8x8xf32>
    %43 = tpu.concatenate %35, %36, %37, %38, %39, %40, %41, %42 in 0 : vector<1x8x8xf32>, vector<1x8x8xf32>, vector<1x8x8xf32>, vector<1x8x8xf32>, vector<1x8x8xf32>, vector<1x8x8xf32>, vector<1x8x8xf32>, vector<1x8x8xf32> -> vector<8x8x8xf32>
    %44 = arith.truncf %43 : vector<8x8x8xf32> to vector<8x8x8xbf16>
    %45 = vector.extract_strided_slice %17 {offsets = [0, 0], sizes = [8, 8], strides = [1, 1]} : vector<16x32xf32> to vector<8x8xf32>
    %46 = vector.extract_strided_slice %17 {offsets = [0, 8], sizes = [8, 8], strides = [1, 1]} : vector<16x32xf32> to vector<8x8xf32>
    %47 = vector.extract_strided_slice %17 {offsets = [0, 16], sizes = [8, 8], strides = [1, 1]} : vector<16x32xf32> to vector<8x8xf32>
    %48 = vector.extract_strided_slice %17 {offsets = [0, 24], sizes = [8, 8], strides = [1, 1]} : vector<16x32xf32> to vector<8x8xf32>
    %49 = vector.extract_strided_slice %17 {offsets = [8, 0], sizes = [8, 8], strides = [1, 1]} : vector<16x32xf32> to vector<8x8xf32>
    %50 = vector.extract_strided_slice %17 {offsets = [8, 8], sizes = [8, 8], strides = [1, 1]} : vector<16x32xf32> to vector<8x8xf32>
    %51 = vector.extract_strided_slice %17 {offsets = [8, 16], sizes = [8, 8], strides = [1, 1]} : vector<16x32xf32> to vector<8x8xf32>
    %52 = vector.extract_strided_slice %17 {offsets = [8, 24], sizes = [8, 8], strides = [1, 1]} : vector<16x32xf32> to vector<8x8xf32>
    %53 = vector.shape_cast %45 : vector<8x8xf32> to vector<1x8x8xf32>
    %54 = vector.shape_cast %46 : vector<8x8xf32> to vector<1x8x8xf32>
    %55 = vector.shape_cast %47 : vector<8x8xf32> to vector<1x8x8xf32>
    %56 = vector.shape_cast %48 : vector<8x8xf32> to vector<1x8x8xf32>
    %57 = vector.shape_cast %49 : vector<8x8xf32> to vector<1x8x8xf32>
    %58 = vector.shape_cast %50 : vector<8x8xf32> to vector<1x8x8xf32>
    %59 = vector.shape_cast %51 : vector<8x8xf32> to vector<1x8x8xf32>
    %60 = vector.shape_cast %52 : vector<8x8xf32> to vector<1x8x8xf32>
    %61 = tpu.concatenate %53, %54, %55, %56, %57, %58, %59, %60 in 0 : vector<1x8x8xf32>, vector<1x8x8xf32>, vector<1x8x8xf32>, vector<1x8x8xf32>, vector<1x8x8xf32>, vector<1x8x8xf32>, vector<1x8x8xf32>, vector<1x8x8xf32> -> vector<8x8x8xf32>
    %62 = arith.truncf %61 : vector<8x8x8xf32> to vector<8x8x8xbf16>
    %63 = vector.extract_strided_slice %26 {offsets = [0, 0], sizes = [8, 8], strides = [1, 1]} : vector<16x32xf32> to vector<8x8xf32>
    %64 = vector.extract_strided_slice %26 {offsets = [0, 8], sizes = [8, 8], strides = [1, 1]} : vector<16x32xf32> to vector<8x8xf32>
    %65 = vector.extract_strided_slice %26 {offsets = [0, 16], sizes = [8, 8], strides = [1, 1]} : vector<16x32xf32> to vector<8x8xf32>
    %66 = vector.extract_strided_slice %26 {offsets = [0, 24], sizes = [8, 8], strides = [1, 1]} : vector<16x32xf32> to vector<8x8xf32>
    %67 = vector.extract_strided_slice %26 {offsets = [8, 0], sizes = [8, 8], strides = [1, 1]} : vector<16x32xf32> to vector<8x8xf32>
    %68 = vector.extract_strided_slice %26 {offsets = [8, 8], sizes = [8, 8], strides = [1, 1]} : vector<16x32xf32> to vector<8x8xf32>
    %69 = vector.extract_strided_slice %26 {offsets = [8, 16], sizes = [8, 8], strides = [1, 1]} : vector<16x32xf32> to vector<8x8xf32>
    %70 = vector.extract_strided_slice %26 {offsets = [8, 24], sizes = [8, 8], strides = [1, 1]} : vector<16x32xf32> to vector<8x8xf32>
    %71 = vector.shape_cast %63 : vector<8x8xf32> to vector<1x8x8xf32>
    %72 = vector.shape_cast %64 : vector<8x8xf32> to vector<1x8x8xf32>
    %73 = vector.shape_cast %65 : vector<8x8xf32> to vector<1x8x8xf32>
    %74 = vector.shape_cast %66 : vector<8x8xf32> to vector<1x8x8xf32>
    %75 = vector.shape_cast %67 : vector<8x8xf32> to vector<1x8x8xf32>
    %76 = vector.shape_cast %68 : vector<8x8xf32> to vector<1x8x8xf32>
    %77 = vector.shape_cast %69 : vector<8x8xf32> to vector<1x8x8xf32>
    %78 = vector.shape_cast %70 : vector<8x8xf32> to vector<1x8x8xf32>
    %79 = tpu.concatenate %71, %72, %73, %74, %75, %76, %77, %78 in 0 : vector<1x8x8xf32>, vector<1x8x8xf32>, vector<1x8x8xf32>, vector<1x8x8xf32>, vector<1x8x8xf32>, vector<1x8x8xf32>, vector<1x8x8xf32>, vector<1x8x8xf32> -> vector<8x8x8xf32>
    %80 = arith.truncf %79 : vector<8x8x8xf32> to vector<8x8x8xbf16>
    "tpu.trace_start"() <{level = 10 : i32, message = "bqd,bkd->bqk"}> : () -> ()
    %cst_19 = arith.constant dense<0.000000e+00> : vector<8x8x8xf32>
    %81 = tpu.matmul %44, %62, %cst_19 {dimension_numbers = #tpu.dot_dimension_numbers<[2], [2], [1], [1], [0, 0, 0, 1, 1, 1], [0], [0]>} : vector<8x8x8xbf16>, vector<8x8x8xbf16>, vector<8x8x8xf32> -> vector<8x8x8xf32>
    "tpu.trace_stop"() : () -> ()
    %cst_20 = arith.constant dense<0xFF800000> : vector<8x8xf32>
    %82 = vector.multi_reduction <maximumf>, %81, %cst_20 [2] : vector<8x8x8xf32> to vector<8x8xf32>
    %83 = vector.shape_cast %82 : vector<8x8xf32> to vector<8x8x1xf32>
    %84 = vector.broadcast %83 : vector<8x8x1xf32> to vector<8x8x8xf32>
    %85 = arith.subf %81, %84 : vector<8x8x8xf32>
    %86 = math.exp %85 : vector<8x8x8xf32>
    %cst_21 = arith.constant dense<0.000000e+00> : vector<8x8xf32>
    %87 = vector.multi_reduction <add>, %86, %cst_21 [2] : vector<8x8x8xf32> to vector<8x8xf32>
    %88 = vector.shape_cast %87 : vector<8x8xf32> to vector<8x8x1xf32>
    %89 = tpu.reciprocal %88 {approx = true} : vector<8x8x1xf32> -> vector<8x8x1xf32>
    %90 = vector.broadcast %89 : vector<8x8x1xf32> to vector<8x8x8xf32>
    %91 = arith.mulf %86, %90 : vector<8x8x8xf32>
    %92 = arith.truncf %91 : vector<8x8x8xf32> to vector<8x8x8xbf16>
    "tpu.trace_start"() <{level = 10 : i32, message = "bqk,bkd->bqd"}> : () -> ()
    %cst_22 = arith.constant dense<0.000000e+00> : vector<8x8x8xf32>
    %93 = tpu.matmul %92, %80, %cst_22 {dimension_numbers = #tpu.dot_dimension_numbers<[2], [1], [1], [2], [0, 0, 0, 1, 1, 2], [0], [0]>} : vector<8x8x8xbf16>, vector<8x8x8xbf16>, vector<8x8x8xf32> -> vector<8x8x8xf32>
    "tpu.trace_stop"() : () -> ()
    %94 = vector.extract_strided_slice %93 {offsets = [0, 0, 0], sizes = [1, 8, 8], strides = [1, 1, 1]} : vector<8x8x8xf32> to vector<1x8x8xf32>
    %95 = vector.shape_cast %94 : vector<1x8x8xf32> to vector<8x8xf32>
    %96 = vector.extract_strided_slice %93 {offsets = [1, 0, 0], sizes = [1, 8, 8], strides = [1, 1, 1]} : vector<8x8x8xf32> to vector<1x8x8xf32>
    %97 = vector.shape_cast %96 : vector<1x8x8xf32> to vector<8x8xf32>
    %98 = vector.extract_strided_slice %93 {offsets = [2, 0, 0], sizes = [1, 8, 8], strides = [1, 1, 1]} : vector<8x8x8xf32> to vector<1x8x8xf32>
    %99 = vector.shape_cast %98 : vector<1x8x8xf32> to vector<8x8xf32>
    %100 = vector.extract_strided_slice %93 {offsets = [3, 0, 0], sizes = [1, 8, 8], strides = [1, 1, 1]} : vector<8x8x8xf32> to vector<1x8x8xf32>
    %101 = vector.shape_cast %100 : vector<1x8x8xf32> to vector<8x8xf32>
    %102 = tpu.concatenate %95, %97, %99, %101 in 1 : vector<8x8xf32>, vector<8x8xf32>, vector<8x8xf32>, vector<8x8xf32> -> vector<8x32xf32>
    %103 = vector.extract_strided_slice %93 {offsets = [4, 0, 0], sizes = [1, 8, 8], strides = [1, 1, 1]} : vector<8x8x8xf32> to vector<1x8x8xf32>
    %104 = vector.shape_cast %103 : vector<1x8x8xf32> to vector<8x8xf32>
    %105 = vector.extract_strided_slice %93 {offsets = [5, 0, 0], sizes = [1, 8, 8], strides = [1, 1, 1]} : vector<8x8x8xf32> to vector<1x8x8xf32>
    %106 = vector.shape_cast %105 : vector<1x8x8xf32> to vector<8x8xf32>
    %107 = vector.extract_strided_slice %93 {offsets = [6, 0, 0], sizes = [1, 8, 8], strides = [1, 1, 1]} : vector<8x8x8xf32> to vector<1x8x8xf32>
    %108 = vector.shape_cast %107 : vector<1x8x8xf32> to vector<8x8xf32>
    %109 = vector.extract_strided_slice %93 {offsets = [7, 0, 0], sizes = [1, 8, 8], strides = [1, 1, 1]} : vector<8x8x8xf32> to vector<1x8x8xf32>
    %110 = vector.shape_cast %109 : vector<1x8x8xf32> to vector<8x8xf32>
    %111 = tpu.concatenate %104, %106, %108, %110 in 1 : vector<8x8xf32>, vector<8x8xf32>, vector<8x8xf32>, vector<8x8xf32> -> vector<8x32xf32>
    %112 = tpu.concatenate %102, %111 in 0 : vector<8x32xf32>, vector<8x32xf32> -> vector<16x32xf32>
    %113 = arith.truncf %112 : vector<16x32xf32> to vector<16x32xbf16>
    %c0_23 = arith.constant 0 : index
    %c0_24 = arith.constant 0 : index
    %114 = vector.load %arg7[%c0_23, %c0_24] : memref<32x32xbf16, #tpu.memory_space<vmem>>, vector<32x32xbf16>
    %cst_25 = arith.constant dense<0.000000e+00> : vector<16x32xf32>
    %115 = tpu.matmul %113, %114, %cst_25 {dimension_numbers = #tpu.dot_dimension_numbers<[1], [0], [0], [1], [0, 0, 1, 1], [], []>} : vector<16x32xbf16>, vector<32x32xbf16>, vector<16x32xf32> -> vector<16x32xf32>
    %c0_26 = arith.constant 0 : index
    %c0_27 = arith.constant 0 : index
    %116 = vector.load %arg11[%c0_26, %c0_27] : memref<1x32xf32, #tpu.memory_space<vmem>>, vector<1x32xf32>
    %117 = vector.shape_cast %116 : vector<1x32xf32> to vector<32xf32>
    %118 = vector.shape_cast %117 : vector<32xf32> to vector<1x32xf32>
    %119 = vector.broadcast %118 : vector<1x32xf32> to vector<16x32xf32>
    %120 = arith.addf %115, %119 : vector<16x32xf32>
    %c0_28 = arith.constant 0 : index
    %c0_29 = arith.constant 0 : index
    %121 = vector.load %arg12[%c0_28, %c0_29] : memref<16x32xf32, #tpu.memory_space<vmem>>, vector<16x32xf32>
    tpu.vector_store %arg12[%c0_28, %c0_29], %120 {strides = array<i32>} : memref<16x32xf32, #tpu.memory_space<vmem>>, vector<16x32xf32>,
    return
  }
  func.func @transform_0(%arg0: i32) -> (i32, i32) {
    %c0_i32 = arith.constant 0 : i32
    %c0_i32_0 = arith.constant 0 : i32
    return %arg0, %c0_i32 : i32, i32
  }
  func.func @transform_1(%arg0: i32) -> (i32, i32) {
    %c0_i32 = arith.constant 0 : i32
    %c0_i32_0 = arith.constant 0 : i32
    return %arg0, %c0_i32 : i32, i32
  }
  func.func @transform_2(%arg0: i32) -> (i32, i32) {
    %c0_i32 = arith.constant 0 : i32
    %c0_i32_0 = arith.constant 0 : i32
    return %arg0, %c0_i32 : i32, i32
  }
  func.func @transform_3(%arg0: i32) -> (i32, i32) {
    %c0_i32 = arith.constant 0 : i32
    %c0_i32_0 = arith.constant 0 : i32
    %c0_i32_1 = arith.constant 0 : i32
    return %c0_i32, %c0_i32_0 : i32, i32
  }
  func.func @transform_4(%arg0: i32) -> (i32, i32) {
    %c0_i32 = arith.constant 0 : i32
    %c0_i32_0 = arith.constant 0 : i32
    %c0_i32_1 = arith.constant 0 : i32
    return %c0_i32, %c0_i32_0 : i32, i32
  }
  func.func @transform_5(%arg0: i32) -> (i32, i32) {
    %c0_i32 = arith.constant 0 : i32
    %c0_i32_0 = arith.constant 0 : i32
    %c0_i32_1 = arith.constant 0 : i32
    return %c0_i32, %c0_i32_0 : i32, i32
  }
  func.func @transform_6(%arg0: i32) -> (i32, i32) {
    %c0_i32 = arith.constant 0 : i32
    %c0_i32_0 = arith.constant 0 : i32
    %c0_i32_1 = arith.constant 0 : i32
    return %c0_i32, %c0_i32_0 : i32, i32
  }
  func.func @transform_7(%arg0: i32) -> (i32, i32) {
    %c0_i32 = arith.constant 0 : i32
    %c0_i32_0 = arith.constant 0 : i32
    %c0_i32_1 = arith.constant 0 : i32
    return %c0_i32, %c0_i32_0 : i32, i32
  }
  func.func @transform_8(%arg0: i32) -> (i32, i32) {
    %c0_i32 = arith.constant 0 : i32
    %c0_i32_0 = arith.constant 0 : i32
    %c0_i32_1 = arith.constant 0 : i32
    return %c0_i32, %c0_i32_0 : i32, i32
  }
  func.func @transform_9(%arg0: i32) -> (i32, i32) {
    %c0_i32 = arith.constant 0 : i32
    %c0_i32_0 = arith.constant 0 : i32
    %c0_i32_1 = arith.constant 0 : i32
    return %c0_i32, %c0_i32_0 : i32, i32
  }
  func.func @transform_10(%arg0: i32) -> (i32, i32) {
    %c0_i32 = arith.constant 0 : i32
    %c0_i32_0 = arith.constant 0 : i32
    %c0_i32_1 = arith.constant 0 : i32
    return %c0_i32, %c0_i32_0 : i32, i32
  }
  func.func @transform_11(%arg0: i32) -> (i32, i32) {
    %c0_i32 = arith.constant 0 : i32
    %c0_i32_0 = arith.constant 0 : i32
    return %arg0, %c0_i32 : i32, i32
  }
}

</mosaic_0001>

<bundles_post_ra>
// kernel: multihead_self_attention.1
= control target key start
LH: loop header
LB: loop body
LE: loop exit
PB: predicated region body
PF: predicated region fallthrough
CT: control target
= control target key end

     0   :  { %16 = vsyncpa [#allocation3], 0  ;;  %s2131_s0 = inlined_call_operand.hbm [shape: f32[16,32], index: 0, kind: input, shape index: {}]   ;;  %s2132_s1 = inlined_call_operand.hbm [shape: f32[16,32], index: 1, kind: input, shape index: {}]   ;;  %s2133_s2 = inlined_call_operand.hbm [shape: f32[16,32], index: 2, kind: input, shape index: {}]   ;;  %s2134_s3 = inlined_call_operand.vmem [shape: bf16[32,32], index: 3, kind: input, shape index: {}]   ;;  %s2135_s4 = inlined_call_operand.hbm [shape: bf16[32,32], index: 4, kind: input, shape index: {}]   ;;  %s2136_s5 = inlined_call_operand.hbm [shape: bf16[32,32], index: 5, kind: input, shape index: {}]   ;;  %s2137_s6 = inlined_call_operand.hbm [shape: bf16[32,32], index: 6, kind: input, shape index: {}]   ;;  %s2138_s7 = inlined_call_operand.vmem [shape: f32[1,32], index: 7, kind: input, shape index: {}]   ;;  %s2139_s8 = inlined_call_operand.vmem [shape: f32[1,32], index: 8, kind: input, shape index: {}]   ;;  %s2140_s9 = inlined_call_operand.vmem [shape: f32[1,32], index: 9, kind: input, shape index: {}]   ;;  %s2141_s10 = inlined_call_operand.vmem [shape: f32[1,32], index: 10, kind: input, shape index: {}]   ;;  %s2142_s11 = inlined_call_operand.hbm [shape: f32[16,32], index: 11, kind: output, shape index: {}]  }
   0x1   :  { %17 = vsyncpa [#allocation6], 0 }
   0x2   :  { %18 = vsyncpa [#allocation9], 0 }
   0x3   :  { %19 = vsyncpa [#allocation12], 0 }
   0x4   :  { %20 = vsyncpa [#allocation4], 0  ;;  %s1800_s17 = smov [#allocation5]   ;;  %s1801_s19 = smov [#allocation8]  }
   0x5   :  { %s38_s18 = sshll.u32 %s1800_s17, 4  ;;  %s64_s20 = sshll.u32 %s1801_s19, 4  ;;  %s39_s18 = int_to_ptr.vmem [resolvable:$true] %s38_s18  ;;  %s65_s20 = int_to_ptr.vmem [resolvable:$true] %s64_s20 }
   0x6   :  { %s1658_s21 = scalar_lea.vmem %s39_s18, 256  ;;  %p1663_p1 = scmp.lt.s32.totalorder %s39_s18, %s39_s18 }
   0x7   :  { %p1659_p0 = scmp.ne.s32.totalorder %s39_s18, %s1658_s21  ;;  %p1664_p2 = scmp.lt.s32.totalorder %s1658_s21, %s1658_s21 }
   0x9   :  { %p1665_p3 = por %p1664_p2, %p1663_p1 }
   0xb   :  { %p1666_p4 = pnand %p1665_p3, %p1659_p0 }
   0xd   :  { %1669 = shalt.err (!%p1666_p4)
}
   0xe   :  { %s1802_s22 = smov 128   ;;  %s1803_s23 = smov 8  }
   0xf   :  { %44 = dma.hbm_to_vmem [thread:$0]  %s2132_s1, 256, %s39_s18, [#allocation6], %s1802_s22, %s1802_s22, %s1803_s23  }
  0x10   :  { %s1678_s26 = scalar_lea.vmem %s65_s20, 256  ;;  %p1683_p6 = scmp.lt.s32.totalorder %s65_s20, %s65_s20 }
  0x11   :  { %p1679_p5 = scmp.ne.s32.totalorder %s65_s20, %s1678_s26  ;;  %p1684_p7 = scmp.lt.s32.totalorder %s1678_s26, %s1678_s26 }
  0x13   :  { %p1685_p8 = por %p1684_p7, %p1683_p6 }
  0x15   :  { %p1686_p9 = pnand %p1685_p8, %p1679_p5 }
  0x17   :  { %1689 = shalt.err (!%p1686_p9)
}
  0x18   :  { %s1804_s27 = smov 64   ;;  %s1805_s28 = smov 4  }
  0x19   :  { %70 = dma.hbm_to_vmem [thread:$0]  %s2135_s4, 256, %s65_s20, [#allocation9], %s1804_s27, %s1804_s27, %s1805_s28  }
  0x1a   :  { %s1806_s12 = smov [#allocation2]   ;;  %s1807_s14 = smov [#allocation7]  }
  0x1b   :  { %s26_s13 = sshll.u32 %s1806_s12, 4  ;;  %s50_s1 = sshll.u32 %s1807_s14, 4  ;;  %s27_s13 = int_to_ptr.vmem [resolvable:$true] %s26_s13  ;;  %s51_s1 = int_to_ptr.vmem [resolvable:$true] %s50_s1 }
  0x1c   :  { %s1698_s15 = scalar_lea.vmem %s27_s13, 256  ;;  %p1703_p11 = scmp.lt.s32.totalorder %s27_s13, %s27_s13 }
  0x1d   :  { %p1699_p10 = scmp.ne.s32.totalorder %s27_s13, %s1698_s15  ;;  %p1704_p12 = scmp.lt.s32.totalorder %s1698_s15, %s1698_s15 }
  0x1f   :  { %p1705_p13 = por %p1704_p12, %p1703_p11 }
  0x21   :  { %p1706_p0 = pnand %p1705_p13, %p1699_p10 }
  0x23   :  { %1709 = shalt.err (!%p1706_p0)
}
  0x24   :  { %32 = dma.hbm_to_vmem [thread:$0]  %s2131_s0, 256, %s27_s13, [#allocation3], %s1802_s22, %s1802_s22, %s1803_s23  }
  0x25   :  { %s1718_s4 = scalar_lea.vmem %s51_s1, 256  ;;  %p1723_p2 = scmp.lt.s32.totalorder %s51_s1, %s51_s1 }
  0x26   :  { %p1719_p1 = scmp.ne.s32.totalorder %s51_s1, %s1718_s4  ;;  %p1724_p3 = scmp.lt.s32.totalorder %s1718_s4, %s1718_s4 }
  0x28   :  { %p1725_p4 = por %p1724_p3, %p1723_p2 }
  0x2a   :  { %p1726_p5 = pnand %p1725_p4, %p1719_p1 }
  0x2c   :  { %1729 = shalt.err (!%p1726_p5)
}
  0x2d   :  { %56 = dma.hbm_to_vmem [thread:$0]  %s2133_s2, 256, %s51_s1, [#allocation6], %s1802_s22, %s1802_s22, %s1803_s23  }
  0x2e   :  { %s1808_s20 = smov [#allocation10]   ;;  %s1809_s24 = smov [#allocation11]  }
  0x2f   :  { %s76_s21 = sshll.u32 %s1808_s20, 4  ;;  %s88_s25 = sshll.u32 %s1809_s24, 4  ;;  %s77_s21 = int_to_ptr.vmem [resolvable:$true] %s76_s21  ;;  %s89_s25 = int_to_ptr.vmem [resolvable:$true] %s88_s25 }
  0x30   :  { %s1738_s0 = scalar_lea.vmem %s77_s21, 256  ;;  %p1743_p7 = scmp.lt.s32.totalorder %s77_s21, %s77_s21 }
  0x31   :  { %p1739_p6 = scmp.ne.s32.totalorder %s77_s21, %s1738_s0  ;;  %p1744_p8 = scmp.lt.s32.totalorder %s1738_s0, %s1738_s0 }
  0x33   :  { %p1745_p9 = por %p1744_p8, %p1743_p7 }
  0x35   :  { %p1746_p10 = pnand %p1745_p9, %p1739_p6 }
  0x37   :  { %1749 = shalt.err (!%p1746_p10)
}
  0x38   :  { %82 = dma.hbm_to_vmem [thread:$0]  %s2136_s5, 256, %s77_s21, [#allocation9], %s1804_s27, %s1804_s27, %s1805_s28  }
  0x39   :  { %s1758_s2 = scalar_lea.vmem %s89_s25, 256  ;;  %p1763_p12 = scmp.lt.s32.totalorder %s89_s25, %s89_s25 }
  0x3a   :  { %p1759_p11 = scmp.ne.s32.totalorder %s89_s25, %s1758_s2  ;;  %p1764_p13 = scmp.lt.s32.totalorder %s1758_s2, %s1758_s2 }
  0x3c   :  { %p1765_p0 = por %p1764_p13, %p1763_p12 }
  0x3e   :  { %p1766_p1 = pnand %p1765_p0, %p1759_p11 }
  0x40   :  { %1769 = shalt.err (!%p1766_p1)
}
  0x41   :  { %94 = dma.hbm_to_vmem [thread:$0]  %s2137_s6, 256, %s89_s25, [#allocation12], %s1804_s27, %s1804_s27, %s1805_s28  }
  0x42   :  { %1790 = dma.done.wait [#allocation3], 256  }
  0x43   :  { %1791 = vsyncadd [#allocation3], 4294967040 }
  0x44   :  { %1792 = dma.done.wait [#allocation6], 512  }
  0x45   :  { %1793 = vsyncadd [#allocation6], 4294966784 }
  0x46   :  { %1794 = dma.done.wait [#allocation9], 512  }
  0x47   :  { %1795 = vsyncadd [#allocation9], 4294966784 }
  0x48   :  { %1796 = dma.done.wait [#allocation12], 256  }
  0x49   :  { %1797 = vsyncadd [#allocation12], 4294967040  ;;  %v1810_v0 = vmov 0.0   ;;  %vm1811_vm0 = vmmov 0   ;;  %v1610_v1 = vld [vmem:[%s2134_s3 + $0x8] sm:$0xff]   ;;  %v1611_v2 = vld [vmem:[#allocation8 + $0x8] sm:$0xff]  }
  0x4a   :  { %1449 = vmatprep.subr.bf16.mxu0 %v1810_v0  ;;  %1457 = vmatprep.subr.bf16.mxu1 %v1810_v0  ;;  %v1612_v3 = vld [vmem:[%s2134_s3] sm:$0xff]   ;;  %v1613_v4 = vld [vmem:[#allocation8] sm:$0xff]   ;;  %v123_v6 = vld [vmem:[#allocation2 + $0x8] sm:$0xff]  ;;  %vm148_vm1 = vcmask 261120   ;;  %s1812_s15 = smov 120   ;;  %vm417_vm2 = vcmask 64512  }
  0x4b   :  { %1453 = vmatprep.mubr.msk.bf16.mxu0 %vm1811_vm0, %v1810_v0  ;;  %1461 = vmatprep.mubr.msk.bf16.mxu1 %vm1811_vm0, %v1810_v0  ;;  %v122_v5 = vld [vmem:[#allocation2] sm:$0xff]  ;;  %v193_v7 = vld [vmem:[#allocation5] sm:$0xff]  ;;  %v194_v9 = vld [vmem:[#allocation5 + $0x8] sm:$0xff]  ;;  %vm885_vm3 = vcmask 1043456   ;;  %s1816_s4 = smov 24   ;;  %vm1264_vm4 = vcmask 130048  }
  0x4c   :  { %1450 = vmatpush3.bf16.msra.mxu0 %v1610_v1  ;;  %1458 = vmatpush3.bf16.msra.mxu1 %v1611_v2  ;;  %v124_v8 = vpack.c.bf16 %v123_v6, %v122_v5  ;;  %v195_v10 = vpack.c.bf16 %v194_v9, %v193_v7  ;;  %v1614_v11 = vld [vmem:[#allocation10 + $0x8] sm:$0xff]   ;;  %v1615_v12 = vld [vmem:[#allocation10] sm:$0xff]   ;;  %vm1266_vm5 = vcmask 195584   ;;  %s1817_s20 = smov [#allocation13]  }
  0x4d   :  { %1451 = vmatprep.subr.bf16.mxu0 %v1810_v0  ;;  %1459 = vmatprep.subr.bf16.mxu1 %v1810_v0  ;;  %v263_v13 = vld [vmem:[#allocation7] sm:$0xff]  ;;  %v264_v14 = vld [vmem:[#allocation7 + $0x8] sm:$0xff]  ;;  %s1358_s21 = sshll.u32 %s1817_s20, 4  ;;  %s1359_s21 = int_to_ptr.vmem [resolvable:$true] %s1358_s21 }
  0x4e   :  { %v265_v15 = vpack.c.bf16 %v264_v14, %v263_v13  ;;  %v1373_v16 = vld [vmem:[%s2138_s7] ss:$0 sm:$0xff]  ;;  %s1813_s7 = smov 104   ;;  %s1770_s24 = scalar_lea.vmem %s1359_s21, 256 }
  0x4f   :  { %v1377_v17 = vld [vmem:[%s2139_s8] ss:$0 sm:$0xff]  ;;  %s1814_s8 = smov 112   ;;  %p1771_p2 = scmp.ne.s32.totalorder %s1359_s21, %s1770_s24 }
  0x50   :  { %1452 = vmatpush3.bf16.msra.mxu0 %v1612_v3  ;;  %1460 = vmatpush3.bf16.msra.mxu1 %v1613_v4  ;;  %v1381_v34 = vld [vmem:[%s2140_s9] ss:$0 sm:$0xff]  ;;  %s1815_s9 = smov 16   ;;  %p1775_p3 = scmp.lt.s32.totalorder %s1359_s21, %s1359_s21 }
  0x51   :  { %1465 = vmatprep.subr.bf16.mxu0 %v1810_v0  ;;  %1473 = vmatprep.subr.bf16.mxu1 %v1810_v0  ;;  %p1776_p4 = scmp.lt.s32.totalorder %s1770_s24, %s1770_s24 }
  0x53   :  { %1454 = vmatmul.mubr.msk.bf16.vlgmr.msra.gmra.mxu0 %vm148_vm1, %v124_v8  ;;  %1462 = vmatmul.mubr.msk.bf16.vlgmr.msra.gmra.mxu1 %vm148_vm1, %v195_v10  ;;  %p1777_p5 = por %p1776_p4, %p1775_p3 }
  0x54   :  { %1469 = vmatprep.mubr.msk.bf16.mxu0 %vm1811_vm0, %v1810_v0  ;;  %1475 = vmatprep.mubr.msk.bf16.mxu1 %vm1811_vm0, %v1810_v0 }
  0x55   :  { %1466 = vmatpush3.bf16.msra.mxu0 %v1614_v11  ;;  %p1778_p6 = pnand %p1777_p5, %p1771_p2 }
  0x56   :  { %1467 = vmatprep.subr.bf16.mxu0 %v1810_v0 }
  0x59   :  { %1468 = vmatpush3.bf16.msra.mxu0 %v1615_v12 }
  0x5a   :  { %1479 = vmatprep.subr.bf16.mxu0 %v1810_v0 }
  0x5c   :  { %1470 = vmatmul.mubr.msk.bf16.vlgmr.msra.gmra.mxu0 %vm148_vm1, %v265_v15 }
  0x5d   :  { %1481 = vmatprep.mubr.msk.bf16.mxu0 %vm1811_vm0, %v1810_v0 }
 0x113   :  { %v186_v18 = vpop.f32.mrf.mxu0  ;;  %v256_v20 = vpop.f32.mrf.mxu1 }
 0x114   :  { %v187_v19 = vadd.f32 %v1373_v16, %v186_v18  ;;  %v257_v21 = vadd.f32 %v1377_v17, %v256_v20 }
 0x115   :  { %v1455_v22 = vpop.f32.mrf.mxu0  ;;  %v1463_v23 = vpop.f32.mrf.mxu1 }
 0x116   :  { %334 = vrot.lane.b32.xlu1 %v187_v19, %s1812_s15  ;;  %362 = vrot.lane.b32.xlu0 %v257_v21, %s1812_s15  ;;  %v381_v25 = vpack.c.bf16 %v257_v21, %v257_v21  ;;  %v353_v30 = vpack.c.bf16 %v187_v19, %v187_v19 }
 0x117   :  { %v189_v24 = vpop.f32.mrf.mxu0  ;;  %v259_v26 = vpop.f32.mrf.mxu1 }
 0x118   :  { %v422_v28 = vsel %vm417_vm2, %v381_v25, 0  ;;  %v260_v31 = vadd.f32 %v1377_v17, %v259_v26  ;;  %v190_v32 = vadd.f32 %v1373_v16, %v189_v24 }
 0x119   :  { %v1456_v27 = vpop.f32.mrf.mxu0  ;;  %v1464_v29 = vpop.f32.mrf.mxu1  ;;  %1474 = vmatpush3.bf16.xpose.msra.mxu1 %v422_v28 }
 0x11a   :  { %368 = vrot.lane.b32.xlu1 %v257_v21, %s1813_s7  ;;  %365 = vrot.lane.b32.xlu0 %v257_v21, %s1814_s8  ;;  %v385_v52 = vpack.c.bf16 %v260_v31, %v260_v31  ;;  %v357_v63 = vpack.c.bf16 %v190_v32, %v190_v32 }
 0x11b   :  { %1485 = vmatprep.subr.bf16.mxu1 %v1810_v0 }
 0x11c   :  { %v326_v33 = vpop.f32.mrf.mxu0  ;;  %v606_v57 = vsel %vm417_vm2, %v385_v52, 0 }
 0x11d   :  { %v1988_v1 = vadd.f32 %v1381_v34, %v326_v33 }
 0x11e   :  { %340 = vrot.lane.b32.xlu1 %v187_v19, %s1813_s7  ;;  %337 = vrot.lane.b32.xlu0 %v187_v19, %s1814_s8  ;;  %v1471_v35 = vpop.f32.mrf.mxu0 }
 0x11f   :  { %v409_v5 = vpack.c.bf16 %v1988_v1, %v1988_v1 }
 0x120   :  { %1476 = vmatmul.mubr.msk.bf16.vlgmr.msra.gmra.mxu1 %vm417_vm2, %v353_v30  ;;  %v329_v36 = vpop.f32.mrf.mxu0 }
 0x121   :  { %1487 = vmatprep.mubr.msk.bf16.mxu1 %vm1811_vm0, %v1810_v0  ;;  %v1967_v37 = vadd.f32 %v1381_v34, %v329_v36  ;;  %v887_v9 = vsel %vm885_vm3, %v409_v5, 0 }
 0x122   :  { %375 = vrot.lane.b32.xlu1 %v260_v31, %s1814_s8  ;;  %372 = vrot.lane.b32.xlu0 %v260_v31, %s1812_s15  ;;  %v1472_v38 = vpop.f32.mrf.mxu0 }
 0x126   :  { %378 = vrot.lane.b32.xlu1 %v260_v31, %s1813_s7  ;;  %344 = vrot.lane.b32.xlu0 %v190_v32, %s1812_s15 }
 0x12a   :  { %350 = vrot.lane.b32.xlu1 %v190_v32, %s1813_s7  ;;  %347 = vrot.lane.b32.xlu0 %v190_v32, %s1814_s8 }
 0x188   :  { %v335_v39 = vpop.permute.xlu1 %334  ;;  %v363_v40 = vpop.permute.xlu0 %362 }
 0x189   :  { %v382_v41 = vpack.c.bf16 %v363_v40, %v363_v40  ;;  %v354_v50 = vpack.c.bf16 %v335_v39, %v335_v39 }
 0x18b   :  { %v468_v42 = vsel %vm417_vm2, %v382_v41, 0 }
 0x18c   :  { %v369_v43 = vpop.permute.xlu1 %368  ;;  %v366_v44 = vpop.permute.xlu0 %365  ;;  %1480 = vmatpush3.bf16.xpose.msra.mxu0 %v468_v42 }
 0x18d   :  { %v383_v45 = vpack.c.bf16 %v366_v44, %v366_v44  ;;  %1491 = vmatprep.subr.bf16.mxu0 %v1810_v0  ;;  %v384_v47 = vpack.c.bf16 %v369_v43, %v369_v43 }
 0x18f   :  { %v514_v46 = vsel %vm417_vm2, %v383_v45, 0  ;;  %v560_v51 = vsel %vm417_vm2, %v384_v47, 0 }
 0x190   :  { %v338_v48 = vpop.permute.xlu0 %337  ;;  %v341_v49 = vpop.permute.xlu1 %340  ;;  %1486 = vmatpush3.bf16.xpose.msra.mxu1 %v514_v46 }
 0x191   :  { %1497 = vmatprep.subr.bf16.mxu1 %v1810_v0  ;;  %v355_v54 = vpack.c.bf16 %v338_v48, %v338_v48  ;;  %v356_v58 = vpack.c.bf16 %v341_v49, %v341_v49 }
 0x193   :  { %1482 = vmatmul.mubr.msk.bf16.vlgmr.msra.gmra.mxu0 %vm417_vm2, %v354_v50 }
 0x194   :  { %v373_v53 = vpop.permute.xlu0 %372  ;;  %1492 = vmatpush3.bf16.xpose.msra.mxu0 %v560_v51  ;;  %1493 = vmatprep.mubr.msk.bf16.mxu0 %vm1811_vm0, %v1810_v0  ;;  %v376_v55 = vpop.permute.xlu1 %375 }
 0x195   :  { %1503 = vmatprep.subr.bf16.mxu0 %v1810_v0  ;;  %v386_v56 = vpack.c.bf16 %v373_v53, %v373_v53  ;;  %v387_v60 = vpack.c.bf16 %v376_v55, %v376_v55 }
 0x197   :  { %1488 = vmatmul.mubr.msk.bf16.vlgmr.msra.gmra.mxu1 %vm417_vm2, %v355_v54  ;;  %v652_v59 = vsel %vm417_vm2, %v386_v56, 0  ;;  %v698_v2 = vsel %vm417_vm2, %v387_v60, 0 }
 0x198   :  { %1498 = vmatpush3.bf16.xpose.msra.mxu1 %v606_v57  ;;  %1499 = vmatprep.mubr.msk.bf16.mxu1 %vm1811_vm0, %v1810_v0  ;;  %v379_v61 = vpop.permute.xlu1 %378  ;;  %v345_v62 = vpop.permute.xlu0 %344 }
 0x199   :  { %1509 = vmatprep.subr.bf16.mxu1 %v1810_v0  ;;  %v388_v3 = vpack.c.bf16 %v379_v61, %v379_v61  ;;  %v358_v4 = vpack.c.bf16 %v345_v62, %v345_v62 }
 0x19b   :  { %1494 = vmatmul.mubr.msk.bf16.vlgmr.msra.gmra.mxu0 %vm417_vm2, %v356_v58  ;;  %v744_v7 = vsel %vm417_vm2, %v388_v3, 0 }
 0x19c   :  { %1504 = vmatpush3.bf16.xpose.msra.mxu0 %v652_v59  ;;  %1505 = vmatprep.mubr.msk.bf16.mxu0 %vm1811_vm0, %v1810_v0  ;;  %v348_v6 = vpop.permute.xlu0 %347  ;;  %v351_v10 = vpop.permute.xlu1 %350 }
 0x19d   :  { %1515 = vmatprep.subr.bf16.mxu0 %v1810_v0  ;;  %v359_v8 = vpack.c.bf16 %v348_v6, %v348_v6  ;;  %v360_v11 = vpack.c.bf16 %v351_v10, %v351_v10 }
 0x19f   :  { %1500 = vmatmul.mubr.msk.bf16.vlgmr.msra.gmra.mxu1 %vm417_vm2, %v357_v63 }
 0x1a0   :  { %1510 = vmatpush3.bf16.xpose.msra.mxu1 %v698_v2  ;;  %1511 = vmatprep.mubr.msk.bf16.mxu1 %vm1811_vm0, %v1810_v0 }
 0x1a1   :  { %1521 = vmatprep.subr.bf16.mxu1 %v1810_v0 }
 0x1a3   :  { %1506 = vmatmul.mubr.msk.bf16.vlgmr.msra.gmra.mxu0 %vm417_vm2, %v358_v4 }
 0x1a4   :  { %1516 = vmatpush3.bf16.xpose.msra.mxu0 %v744_v7  ;;  %1517 = vmatprep.mubr.msk.bf16.mxu0 %vm1811_vm0, %v1810_v0 }
 0x1a5   :  { %1527 = vmatprep.subr.bf16.mxu0 %v1810_v0 }
 0x1a7   :  { %1512 = vmatmul.mubr.msk.bf16.vlgmr.msra.gmra.mxu1 %vm417_vm2, %v359_v8 }
 0x1a8   :  { %1522 = vmatpush3.bf16.msra.mxu1 %v887_v9  ;;  %1523 = vmatprep.mubr.msk.bf16.mxu1 %vm1811_vm0, %v1810_v0 }
 0x1a9   :  { %1533 = vmatprep.subr.bf16.mxu1 %v1810_v0 }
 0x1ab   :  { %1518 = vmatmul.mubr.msk.bf16.vlgmr.msra.gmra.mxu0 %vm417_vm2, %v360_v11 }
 0x1ac   :  { %1529 = vmatprep.mubr.msk.bf16.mxu0 %vm1811_vm0, %v1810_v0 }
 0x1e0   :  { %v458_v12 = vpop.f32.mrf.mxu1 }
 0x1e1   :  { %v786_v13 = vsel %vm417_vm2, %v458_v12, -inf }
 0x1e2   :  { %v1477_v14 = vpop.f32.mrf.mxu1  ;;  %787 = vmax.xlane.f32.xlu0 %v786_v13 }
 0x1e4   :  { %v461_v15 = vpop.f32.mrf.mxu1 }
 0x1e6   :  { %v1478_v16 = vpop.f32.mrf.mxu1 }
 0x253   :  { %v504_v17 = vpop.f32.mrf.mxu0 }
 0x254   :  { %v789_v18 = vsel %vm417_vm2, %v504_v17, -inf }
 0x255   :  { %790 = vmax.xlane.f32.xlu1 %v789_v18  ;;  %v1483_v19 = vpop.f32.mrf.mxu0 }
 0x257   :  { %v507_v20 = vpop.f32.mrf.mxu0  ;;  %v550_v21 = vpop.f32.mrf.mxu1 }
 0x258   :  { %v792_v22 = vsel %vm417_vm2, %v550_v21, -inf }
 0x259   :  { %v1489_v23 = vpop.f32.mrf.mxu1  ;;  %793 = vmax.xlane.f32.xlu0 %v792_v22  ;;  %v1484_v24 = vpop.f32.mrf.mxu0 }
 0x25b   :  { %v553_v25 = vpop.f32.mrf.mxu1  ;;  %v596_v26 = vpop.f32.mrf.mxu0 }
 0x25c   :  { %v795_v27 = vsel %vm417_vm2, %v596_v26, -inf }
 0x25d   :  { %v1490_v28 = vpop.f32.mrf.mxu1  ;;  %796 = vmax.xlane.f32.xlu0 %v795_v27  ;;  %v1495_v29 = vpop.f32.mrf.mxu0 }
 0x25f   :  { %v599_v30 = vpop.f32.mrf.mxu0  ;;  %v2014_v31 = vpop.f32.mrf.mxu1 }
 0x260   :  { %v798_v32 = vsel %vm417_vm2, %v2014_v31, -inf }
 0x261   :  { %v1501_v33 = vpop.f32.mrf.mxu1  ;;  %799 = vmax.xlane.f32.xlu1 %v798_v32  ;;  %v1496_v34 = vpop.f32.mrf.mxu0 }
 0x263   :  { %v645_v35 = vpop.f32.mrf.mxu1  ;;  %v2018_v36 = vpop.f32.mrf.mxu0 }
 0x264   :  { %v801_v38 = vsel %vm417_vm2, %v2018_v36, -inf }
 0x265   :  { %v1502_v39 = vpop.f32.mrf.mxu1  ;;  %802 = vmax.xlane.f32.xlu0 %v801_v38  ;;  %v1507_v40 = vpop.f32.mrf.mxu0 }
 0x267   :  { %v691_v41 = vpop.f32.mrf.mxu0  ;;  %v734_v42 = vpop.f32.mrf.mxu1 }
 0x268   :  { %v804_v43 = vsel %vm417_vm2, %v734_v42, -inf }
 0x269   :  { %v1513_v44 = vpop.f32.mrf.mxu1  ;;  %805 = vmax.xlane.f32.xlu1 %v804_v43  ;;  %v1508_v45 = vpop.f32.mrf.mxu0 }
 0x26b   :  { %v737_v46 = vpop.f32.mrf.mxu1  ;;  %v780_v47 = vpop.f32.mrf.mxu0 }
 0x26c   :  { %v807_v49 = vsel %vm417_vm2, %v780_v47, -inf  ;;  %v788_v53 = vpop.xlane.xlu0 %787 }
 0x26d   :  { %v1514_v48 = vpop.f32.mrf.mxu1  ;;  %808 = vmax.xlane.f32.xlu0 %v807_v49  ;;  %v1519_v50 = vpop.f32.mrf.mxu0  ;;  %v810_v54 = vsub.f32 %v458_v12, %v788_v53 }
 0x26f   :  { %v783_v51 = vpop.f32.mrf.mxu0  ;;  %v818_v55 = vmul.f32 1.442695, %v810_v54 }
 0x271   :  { %v1520_v52 = vpop.f32.mrf.mxu0  ;;  %1618 = vpow2.f32 %v818_v55 }
 0x272   :  { %v413_v52 = vpack.c.bf16 %v1967_v37, %v1967_v37 }
 0x27a   :  { %393 = vrot.lane.b32.xlu1 %v1988_v1, %s1814_s8 }
 0x27e   :  { %v2028_v56 = vpop.eup %1618 }
 0x27f   :  { %v834_v57 = vsel %vm417_vm2, %v2028_v56, 0.0 }
 0x283   :  { %390 = vrot.lane.b32.xlu0 %v1988_v1, %s1812_s15 }
 0x29e   :  { %835 = vadd.xlane.f32.xlu1 %v834_v57  ;;  %v1071_v57 = vsel %vm885_vm3, %v413_v52, 0 }
 0x2de   :  { %v791_v58 = vpop.xlane.xlu1 %790 }
 0x2df   :  { %v811_v59 = vsub.f32 %v504_v17, %v791_v58 }
 0x2e1   :  { %v820_v60 = vmul.f32 1.442695, %v811_v59 }
 0x2e2   :  { %v794_v61 = vpop.xlane.xlu0 %793 }
 0x2e3   :  { %1620 = vpow2.f32 %v820_v60  ;;  %v812_v62 = vsub.f32 %v550_v21, %v794_v61 }
 0x2e5   :  { %v822_v63 = vmul.f32 1.442695, %v812_v62 }
 0x2e6   :  { %v797_v2 = vpop.xlane.xlu0 %796 }
 0x2e7   :  { %1622 = vpow2.f32 %v822_v63  ;;  %v813_v3 = vsub.f32 %v596_v26, %v797_v2 }
 0x2e9   :  { %v824_v4 = vmul.f32 1.442695, %v813_v3 }
 0x2ea   :  { %v800_v16 = vpop.xlane.xlu1 %799 }
 0x2eb   :  { %1624 = vpow2.f32 %v824_v4  ;;  %v814_v17 = vsub.f32 %v2014_v31, %v800_v16 }
 0x2ed   :  { %v826_v20 = vmul.f32 1.442695, %v814_v17 }
 0x2ee   :  { %v803_v7 = vpop.xlane.xlu0 %802 }
 0x2ef   :  { %v815_v19 = vsub.f32 %v2018_v36, %v803_v7  ;;  %1626 = vpow2.f32 %v826_v20 }
 0x2f0   :  { %v2032_v5 = vpop.eup %1620 }
 0x2f1   :  { %v837_v6 = vsel %vm417_vm2, %v2032_v5, 0.0  ;;  %v828_v22 = vmul.f32 1.442695, %v815_v19 }
 0x2f2   :  { %838 = vadd.xlane.f32.xlu0 %v837_v6  ;;  %v806_v18 = vpop.xlane.xlu1 %805 }
 0x2f3   :  { %v816_v21 = vsub.f32 %v734_v42, %v806_v18  ;;  %1628 = vpow2.f32 %v828_v22 }
 0x2f4   :  { %v2036_v8 = vpop.eup %1622 }
 0x2f5   :  { %v840_v9 = vsel %vm417_vm2, %v2036_v8, 0.0  ;;  %v830_v23 = vmul.f32 1.442695, %v816_v21 }
 0x2f6   :  { %841 = vadd.xlane.f32.xlu1 %v840_v9  ;;  %v809_v10 = vpop.xlane.xlu0 %808  ;;  %v394_v26 = vpop.permute.xlu1 %393 }
 0x2f7   :  { %v817_v24 = vsub.f32 %v780_v47, %v809_v10  ;;  %1630 = vpow2.f32 %v830_v23  ;;  %v411_v36 = vpack.c.bf16 %v394_v26, %v394_v26 }
 0x2f8   :  { %v2040_v11 = vpop.eup %1624 }
 0x2f9   :  { %v843_v12 = vsel %vm417_vm2, %v2040_v11, 0.0  ;;  %v832_v25 = vmul.f32 1.442695, %v817_v24  ;;  %v979_v40 = vsel %vm885_vm3, %v411_v36, 0  ;;  %v1616_v36 = vld [vmem:[#allocation11 + $0x8] sm:$0xff]  }
 0x2fa   :  { %844 = vadd.xlane.f32.xlu0 %v843_v12  ;;  %v391_v13 = vpop.permute.xlu0 %390 }
 0x2fb   :  { %v410_v14 = vpack.c.bf16 %v391_v13, %v391_v13  ;;  %1632 = vpow2.f32 %v832_v25 }
 0x2fc   :  { %v2052_v27 = vpop.eup %1626 }
 0x2fd   :  { %v933_v15 = vsel %vm885_vm3, %v410_v14, 0  ;;  %v846_v29 = vsel %vm417_vm2, %v2052_v27, 0.0 }
 0x2fe   :  { %1528 = vmatpush3.bf16.msra.mxu0 %v933_v15 }
 0x2ff   :  { %1539 = vmatprep.subr.bf16.mxu0 %v1810_v0 }
 0x307   :  { %400 = vrot.lane.b32.xlu1 %v1967_v37, %s1812_s15 }
 0x310   :  { %396 = vrot.lane.b32.xlu0 %v1988_v1, %s1813_s7  ;;  %v2054_v1 = vpop.eup %1628 }
 0x311   :  { %v2058_v30 = vpop.eup %1630  ;;  %v849_v32 = vsel %vm417_vm2, %v2054_v1, 0.0 }
 0x312   :  { %v852_v31 = vsel %vm417_vm2, %v2058_v30, 0.0  ;;  %v2064_v33 = vpop.eup %1632 }
 0x313   :  { %v855_v34 = vsel %vm417_vm2, %v2064_v33, 0.0 }
 0x327   :  { %v836_v28 = vpop.xlane.xlu1 %835 }
 0x328   :  { %1634 = vrcp.f32 %v836_v28 }
 0x32b   :  { %847 = vadd.xlane.f32.xlu1 %v846_v29 }
 0x32f   :  { %853 = vadd.xlane.f32.xlu1 %v852_v31  ;;  %850 = vadd.xlane.f32.xlu0 %v849_v32 }
 0x333   :  { %856 = vadd.xlane.f32.xlu1 %v855_v34 }
 0x335   :  { %v1635_v35 = vpop.eup %1634 }
 0x336   :  { %v866_v38 = vmul.f32 %v1635_v35, %v2028_v56 }
 0x338   :  { %v874_v39 = vpack.c.bf16 %v866_v38, %v866_v38 }
 0x33a   :  { %1524 = vmatmul.mubr.msk.bf16.vlgmr.msra.gmra.mxu1 %vm417_vm2, %v874_v39 }
 0x33b   :  { %1534 = vmatpush3.bf16.msra.mxu1 %v979_v40  ;;  %1535 = vmatprep.mubr.msk.bf16.mxu1 %vm1811_vm0, %v1810_v0  ;;  %v1617_v40 = vld [vmem:[#allocation11] sm:$0xff]  }
 0x33c   :  { %1545 = vmatprep.subr.bf16.mxu1 %v1810_v0 }
 0x344   :  { %406 = vrot.lane.b32.xlu1 %v1967_v37, %s1813_s7 }
 0x345   :  { %403 = vrot.lane.b32.xlu0 %v1967_v37, %s1814_s8 }
 0x37b   :  { %v839_v41 = vpop.xlane.xlu0 %838 }
 0x37c   :  { %1636 = vrcp.f32 %v839_v41 }
 0x37f   :  { %v842_v42 = vpop.xlane.xlu1 %841 }
 0x380   :  { %1638 = vrcp.f32 %v842_v42 }
 0x383   :  { %v845_v43 = vpop.xlane.xlu0 %844  ;;  %v401_v53 = vpop.permute.xlu1 %400 }
 0x384   :  { %1640 = vrcp.f32 %v845_v43  ;;  %v414_v56 = vpack.c.bf16 %v401_v53, %v401_v53 }
 0x386   :  { %v1117_v59 = vsel %vm885_vm3, %v414_v56, 0 }
 0x387   :  { %v397_v44 = vpop.permute.xlu0 %396 }
 0x388   :  { %v412_v46 = vpack.c.bf16 %v397_v44, %v397_v44 }
 0x389   :  { %v1637_v45 = vpop.eup %1636 }
 0x38a   :  { %v867_v47 = vmul.f32 %v1637_v45, %v2032_v5  ;;  %v1025_v50 = vsel %vm885_vm3, %v412_v46, 0 }
 0x38c   :  { %v875_v48 = vpack.c.bf16 %v867_v47, %v867_v47 }
 0x38d   :  { %v1639_v49 = vpop.eup %1638 }
 0x38e   :  { %1530 = vmatmul.mubr.msk.bf16.vlgmr.msra.gmra.mxu0 %vm417_vm2, %v875_v48  ;;  %v868_v51 = vmul.f32 %v1639_v49, %v2036_v8 }
 0x38f   :  { %1540 = vmatpush3.bf16.msra.mxu0 %v1025_v50  ;;  %1541 = vmatprep.mubr.msk.bf16.mxu0 %vm1811_vm0, %v1810_v0 }
 0x390   :  { %v876_v54 = vpack.c.bf16 %v868_v51, %v868_v51  ;;  %1551 = vmatprep.subr.bf16.mxu0 %v1810_v0 }
 0x391   :  { %v1641_v55 = vpop.eup %1640 }
 0x392   :  { %1536 = vmatmul.mubr.msk.bf16.vlgmr.msra.gmra.mxu1 %vm417_vm2, %v876_v54  ;;  %v869_v58 = vmul.f32 %v1641_v55, %v2040_v11 }
 0x393   :  { %1546 = vmatpush3.bf16.msra.mxu1 %v1071_v57  ;;  %1547 = vmatprep.mubr.msk.bf16.mxu1 %vm1811_vm0, %v1810_v0 }
 0x394   :  { %v877_v37 = vpack.c.bf16 %v869_v58, %v869_v58  ;;  %1557 = vmatprep.subr.bf16.mxu1 %v1810_v0 }
 0x396   :  { %1542 = vmatmul.mubr.msk.bf16.vlgmr.msra.gmra.mxu0 %vm417_vm2, %v877_v37 }
 0x397   :  { %1552 = vmatpush3.bf16.msra.mxu0 %v1117_v59  ;;  %1553 = vmatprep.mubr.msk.bf16.mxu0 %vm1811_vm0, %v1810_v0 }
 0x398   :  { %1563 = vmatprep.subr.bf16.mxu0 %v1810_v0 }
 0x3b4   :  { %v848_v60 = vpop.xlane.xlu1 %847 }
 0x3b5   :  { %1642 = vrcp.f32 %v848_v60 }
 0x3b8   :  { %v854_v61 = vpop.xlane.xlu1 %853  ;;  %v851_v62 = vpop.xlane.xlu0 %850 }
 0x3b9   :  { %1644 = vrcp.f32 %v854_v61 }
 0x3ba   :  { %1646 = vrcp.f32 %v851_v62 }
 0x3bc   :  { %v857_v63 = vpop.xlane.xlu1 %856  ;;  %v404_v2 = vpop.permute.xlu0 %403 }
 0x3bd   :  { %1648 = vrcp.f32 %v857_v63  ;;  %v415_v4 = vpack.c.bf16 %v404_v2, %v404_v2 }
 0x3bf   :  { %v1163_v10 = vsel %vm885_vm3, %v415_v4, 0 }
 0x3c0   :  { %v407_v6 = vpop.permute.xlu1 %406 }
 0x3c1   :  { %v416_v11 = vpack.c.bf16 %v407_v6, %v407_v6 }
 0x3c2   :  { %v1643_v3 = vpop.eup %1642 }
 0x3c3   :  { %v870_v5 = vmul.f32 %v1643_v3, %v2052_v27  ;;  %v1209_v16 = vsel %vm885_vm3, %v416_v11, 0 }
 0x3c5   :  { %v878_v7 = vpack.c.bf16 %v870_v5, %v870_v5 }
 0x3c6   :  { %v1645_v8 = vpop.eup %1644 }
 0x3c7   :  { %v1647_v9 = vpop.eup %1646  ;;  %1548 = vmatmul.mubr.msk.bf16.vlgmr.msra.gmra.mxu1 %vm417_vm2, %v878_v7  ;;  %v872_v13 = vmul.f32 %v1645_v8, %v2058_v30 }
 0x3c8   :  { %1558 = vmatpush3.bf16.msra.mxu1 %v1163_v10  ;;  %v871_v12 = vmul.f32 %v1647_v9, %v2054_v1  ;;  %1559 = vmatprep.mubr.msk.bf16.mxu1 %vm1811_vm0, %v1810_v0  ;;  %v1401_v9 = vld [vmem:[%s2141_s10] ss:$0 sm:$0xff] }
 0x3c9   :  { %1569 = vmatprep.subr.bf16.mxu1 %v1810_v0  ;;  %v880_v17 = vpack.c.bf16 %v872_v13, %v872_v13 }
 0x3ca   :  { %v879_v14 = vpack.c.bf16 %v871_v12, %v871_v12  ;;  %v1649_v15 = vpop.eup %1648 }
 0x3cb   :  { %v873_v18 = vmul.f32 %v1649_v15, %v2064_v33 }
 0x3cc   :  { %1554 = vmatmul.mubr.msk.bf16.vlgmr.msra.gmra.mxu0 %vm417_vm2, %v879_v14 }
 0x3cd   :  { %1564 = vmatpush3.bf16.msra.mxu0 %v1209_v16  ;;  %1565 = vmatprep.mubr.msk.bf16.mxu0 %vm1811_vm0, %v1810_v0  ;;  %v881_v19 = vpack.c.bf16 %v873_v18, %v873_v18 }
 0x3cf   :  { %1560 = vmatmul.mubr.msk.bf16.vlgmr.msra.gmra.mxu1 %vm417_vm2, %v880_v17 }
 0x3d0   :  { %1573 = vmatprep.mubr.msk.bf16.mxu1 %vm1811_vm0, %v1810_v0  ;;  %1570 = vmatpush3.bf16.msra.mxu1 %v1616_v36 }
 0x3d1   :  { %1571 = vmatprep.subr.bf16.mxu1 %v1810_v0 }
 0x3d4   :  { %1566 = vmatmul.mubr.msk.bf16.vlgmr.msra.gmra.mxu0 %vm417_vm2, %v881_v19  ;;  %1572 = vmatpush3.bf16.msra.mxu1 %v1617_v40 }
 0x3fa   :  { %v923_v20 = vpop.f32.mrf.mxu1 }
 0x3fc   :  { %v1525_v21 = vpop.f32.mrf.mxu1 }
 0x3fe   :  { %v926_v22 = vpop.f32.mrf.mxu1 }
 0x400   :  { %v1526_v23 = vpop.f32.mrf.mxu1 }
 0x44e   :  { %v969_v24 = vpop.f32.mrf.mxu0 }
 0x450   :  { %v1531_v25 = vpop.f32.mrf.mxu0 }
 0x452   :  { %v972_v26 = vpop.f32.mrf.mxu0  ;;  %v1015_v27 = vpop.f32.mrf.mxu1 }
 0x454   :  { %v1532_v28 = vpop.f32.mrf.mxu0  ;;  %v1537_v1 = vpop.f32.mrf.mxu1 }
 0x456   :  { %v1018_v29 = vpop.f32.mrf.mxu1  ;;  %v1061_v30 = vpop.f32.mrf.mxu0 }
 0x458   :  { %v1538_v31 = vpop.f32.mrf.mxu1  ;;  %v1543_v32 = vpop.f32.mrf.mxu0 }
 0x45a   :  { %v1064_v33 = vpop.f32.mrf.mxu0 }
 0x45c   :  { %v1544_v34 = vpop.f32.mrf.mxu0 }
 0x487   :  { %v1107_v35 = vpop.f32.mrf.mxu1 }
 0x489   :  { %v1549_v38 = vpop.f32.mrf.mxu1 }
 0x48b   :  { %v1110_v39 = vpop.f32.mrf.mxu1 }
 0x48c   :  { %v1153_v41 = vpop.f32.mrf.mxu0 }
 0x48d   :  { %v1595_v42 = vpack.i.bf16 %v1153_v41, %v969_v24  ;;  %v1550_v43 = vpop.f32.mrf.mxu1 }
 0x48e   :  { %v1555_v44 = vpop.f32.mrf.mxu0 }
 0x48f   :  { %1596 = vrot.lane.b32.xlu0 %v1595_v42, %s1803_s23  ;;  %v1199_v45 = vpop.f32.mrf.mxu1 }
 0x490   :  { %v1156_v46 = vpop.f32.mrf.mxu0  ;;  %v1600_v47 = vpack.i.bf16 %v1199_v45, %v1015_v27 }
 0x491   :  { %v1561_v48 = vpop.f32.mrf.mxu1 }
 0x492   :  { %v1556_v49 = vpop.f32.mrf.mxu0  ;;  %1601 = vrot.lane.b32.xlu1 %v1600_v47, %s1815_s9 }
 0x493   :  { %v1202_v50 = vpop.f32.mrf.mxu1 }
 0x494   :  { %v1245_v51 = vpop.f32.mrf.mxu0 }
 0x495   :  { %v1605_v52 = vpack.i.bf16 %v1245_v51, %v1061_v30  ;;  %v1562_v0 = vpop.f32.mrf.mxu1 }
 0x496   :  { %v1567_v53 = vpop.f32.mrf.mxu0 }
 0x497   :  { %1606 = vrot.lane.b32.xlu0 %v1605_v52, %s1816_s4 }
 0x498   :  { %v1248_v54 = vpop.f32.mrf.mxu0 }
 0x49a   :  { %v1568_v55 = vpop.f32.mrf.mxu0 }
 0x501   :  { %v1597_v56 = vpop.permute.xlu0 %1596 }
 0x502   :  { %v1599_v58 = vunpack.i.h.bf16 %v1597_v56  ;;  %v1598_v37 = vunpack.i.l.bf16 %v1597_v56 }
 0x504   :  { %v1602_v57 = vpop.permute.xlu1 %1601  ;;  %v1280_v62 = vsel %vm417_vm2, %v1107_v35, %v1599_v58  ;;  %v1263_v63 = vsel %vm417_vm2, %v923_v20, %v1598_v37 }
 0x505   :  { %v1604_v59 = vunpack.i.h.bf16 %v1602_v57  ;;  %v1603_v60 = vunpack.i.l.bf16 %v1602_v57 }
 0x507   :  { %v1265_v4 = vsel %vm1264_vm4, %v1263_v63, %v1603_v60  ;;  %v1281_v5 = vsel %vm1264_vm4, %v1280_v62, %v1604_v59 }
 0x509   :  { %v1607_v61 = vpop.permute.xlu0 %1606 }
 0x50a   :  { %v1609_v2 = vunpack.i.h.bf16 %v1607_v61  ;;  %v1608_v3 = vunpack.i.l.bf16 %v1607_v61 }
 0x50c   :  { %v1282_v6 = vsel %vm1266_vm5, %v1281_v5, %v1609_v2  ;;  %v1267_v7 = vsel %vm1266_vm5, %v1265_v4, %v1608_v3 }
 0x50d   :  { %v1283_v8 = vpack.c.bf16 %v1282_v6, %v1267_v7 }
 0x50f   :  { %1574 = vmatmul.mubr.msk.bf16.vlgmr.msra.gmra.mxu1 %vm148_vm1, %v1283_v8 }
 0x5cf   :  { %v1344_v10 = vpop.f32.mrf.mxu1 }
 0x5d0   :  { %v1345_v11 = vadd.f32 %v1401_v9, %v1344_v10 }
 0x5d1   :  { %v1575_v12 = vpop.f32.mrf.mxu1 }
 0x5d2   :  { %1351 = vst.msk [vmem:[#allocation13] sm:$0xff] %vm148_vm1, %v1345_v11 }
 0x5d3   :  { %v1347_v13 = vpop.f32.mrf.mxu1 }
 0x5d4   :  { %v1348_v14 = vadd.f32 %v1401_v9, %v1347_v13 }
 0x5d5   :  { %v1576_v15 = vpop.f32.mrf.mxu1 }
 0x5d6   :  { %1352 = vst.msk [vmem:[#allocation13 + $0x8] sm:$0xff] %vm148_vm1, %v1348_v14 }
 0x5d7   :  { %1781 = shalt.err (!%p1778_p6)
}
 0x5d8   :  { %1364 = dma.vmem_to_hbm [thread:$0]  %s1359_s21, 256, %s2142_s11, [#allocation4], %s1802_s22, %s1802_s22, %s1803_s23  }
 0x5d9   :  { %1798 = dma.done.wait [#allocation4], 256  }
 0x5da   :  { %1799 = vsyncadd [#allocation4], 4294967040 }
 0x5db   :  { %1368 = vsyncpa [#allocation3], 1 }
 0x5dc   :  { %1369 = vsyncpa [#allocation6], 1 }
 0x5dd   :  { %1370 = vsyncpa [#allocation9], 1 }
 0x5de   :  { %1371 = vsyncpa [#allocation12], 1 }
 0x5df   :  { %1372 = vsyncpa [#allocation4], 1 }

</bundles_post_ra>
